<compile_context>
chip_gen: v7x
topology: tpu7x:2x2x1
jax: 0.10.0
libtpu: 0.0.40
codegen_flags: <defaults>
</compile_context>

<pallas_src>
import jax
import jax.numpy as jnp
from jax.experimental import pallas as pl
from jax.experimental.pallas import tpu as pltpu


def _round_up(x, m):
    return ((x + m - 1) // m) * m


def _pick_block(extent, max_block, unit=128):
    """Pick (block, padded_extent): block is a multiple of `unit`, <= max_block
    (or a single full-extent block), minimizing padding waste; bigger block on
    ties (fewer grid steps)."""
    ext = _round_up(extent, unit)
    if ext <= max_block:
        return ext, ext
    best_blk, best_key = None, None
    for blk in range(unit, max(max_block, unit) + 1, unit):
        key = (_round_up(ext, blk) - ext, -blk)
        if best_key is None or key < best_key:
            best_key, best_blk = key, blk
    return best_blk, _round_up(ext, best_blk)


def _pick_row_tile(n_rows, max_tile):
    """Row (node) tile.  Single tile only needs sublane (8) alignment; with
    multiple tiles the row dim also becomes H^T's lane dim, so it must be a
    multiple of 128."""
    n8 = _round_up(n_rows, 8)
    if n8 <= max_tile:
        return n8, n8
    return _pick_block(n8, max_tile, unit=128)


def _vmem_limit_bytes(fallback=32 * 1024 * 1024):
    """Per-generation VMEM budget: ~3/4 of physical capacity when the runtime
    reports it (v5e/v6e: 128 MiB, v7x: 64 MiB/TC), else a safe 32 MiB."""
    try:
        info = pltpu.get_tpu_info()
        cap = getattr(info, "vmem_capacity_bytes", None)
        if cap:
            return int(min(cap * 3 // 4, 100 * 1024 * 1024))
    except Exception:
        pass
    return fallback


# ---------------------------------------------------------------------------
# Kernel A:  t1[e, f] = de_inv[e] * sum_n H^T[e, n] * (X @ W)[n, f]
#   grid = (E-blocks, F_out-blocks, N-row-tiles); last axis is the reduction.
# ---------------------------------------------------------------------------
def _edge_accum_kernel(x_ref, w_ref, ht_ref, de_ref, t1_ref, acc_ref):
    @pl.when(pl.program_id(2) == 0)
    def _init():
        acc_ref[...] = jnp.zeros_like(acc_ref)

    # theta tile on the MXU with f32 accumulation.
    # TODO(synk): for very large F_in (>~2K) split theta = X @ W into its own
    # tiled kernel instead of recomputing it per E-block.
    theta = jnp.dot(x_ref[...], w_ref[...], preferred_element_type=jnp.float32)

    # H^T @ theta as a standard last-dim contraction (H^T was materialized in
    # HBM once, so no per-tile transpose through the XLU/vex path).
    acc_ref[...] += jnp.dot(ht_ref[...], theta.astype(ht_ref.dtype),
                            preferred_element_type=jnp.float32)

    @pl.when(pl.program_id(2) == pl.num_programs(2) - 1)
    def _finalize():
        # Hyperedge-degree scaling: elementwise row scale (VPU), then emit the
        # tile in compute dtype (bf16 by default) to halve t1 traffic.
        t1_ref[...] = (acc_ref[...] * de_ref[...]).astype(t1_ref.dtype)


# ---------------------------------------------------------------------------
# Kernel B:  out[n, f] = dv_inv[n] * sum_e H[n, e] * t1[e, f]
#   grid = (N-row-tiles, F_out-blocks, E-blocks); last axis is the reduction.
# ---------------------------------------------------------------------------
def _node_scatter_kernel(h_ref, dv_ref, t1_ref, o_ref, acc_ref):
    @pl.when(pl.program_id(2) == 0)
    def _init():
        acc_ref[...] = jnp.zeros_like(acc_ref)

    # H and t1 are already in the same compute dtype -> no per-step casts.
    acc_ref[...] += jnp.dot(h_ref[...], t1_ref[...],
                            preferred_element_type=jnp.float32)

    @pl.when(pl.program_id(2) == pl.num_programs(2) - 1)
    def _finalize():
        # Vertex-degree scaling: elementwise row scale on the VPU.
        o_ref[...] = (acc_ref[...] * dv_ref[...]).astype(o_ref.dtype)


# ---------------------------------------------------------------------------
# Wrapper: hypergraph-static preprocessing (cacheable) + per-call forward.
# ---------------------------------------------------------------------------
def preprocess_hypergraph(H, D_v, D_e, *, compute_dtype=jnp.bfloat16,
                          max_row_tile=512, edge_block=512):
    """Pads/casts everything that depends only on the hypergraph structure.
    Cache the returned dict across forward calls when H/D_v/D_e are static."""
    N, E = H.shape

    tm, n_pad = _pick_row_tile(N, max_row_tile)
    e_blk, e_pad = _pick_block(E, edge_block, unit=128)

    # Diagonal-matrix inverse == elementwise reciprocal of the diagonal.
    # TODO(synk): if arbitrary dense (non-diagonal) D_v/D_e must be supported,
    # fall back to jnp.linalg.inv and a general matmul path.
    dv_inv = (1.0 / jnp.diagonal(D_v)).astype(jnp.float32)[:, None]   # [N, 1]
    de_inv = (1.0 / jnp.diagonal(D_e)).astype(jnp.float32)[:, None]   # [E, 1]

    Hc = H.astype(compute_dtype)        # 0/1 incidence -> exact in bf16
    Hp = jnp.zeros((n_pad, e_pad), compute_dtype).at[:N, :E].set(Hc)
    HTp = jnp.zeros((e_pad, n_pad), compute_dtype).at[:E, :N].set(Hc.T)
    dvp = jnp.zeros((n_pad, 1), jnp.float32).at[:N, :].set(dv_inv)
    dep = jnp.zeros((e_pad, 1), jnp.float32).at[:E, :].set(de_inv)

    return dict(N=N, E=E, tm=tm, n_pad=n_pad, e_blk=e_blk, e_pad=e_pad,
                compute_dtype=compute_dtype, Hp=Hp, HTp=HTp, dvp=dvp, dep=dep)


def hypergraph_forward(X, W, prep, *, f_block=512):
    """out = dv_inv * (H @ (de_inv * (H^T @ (X @ W))))  via two Pallas kernels."""
    N, E = prep["N"], prep["E"]
    tm, n_pad = prep["tm"], prep["n_pad"]
    e_blk, e_pad = prep["e_blk"], prep["e_pad"]
    cd = prep["compute_dtype"]

    F_in = X.shape[1]
    F_out = W.shape[1]
    f_in_pad = _round_up(F_in, 128)
    f_blk, f_out_pad = _pick_block(F_out, f_block, unit=128)

    Xp = jnp.zeros((n_pad, f_in_pad), cd).at[:N, :F_in].set(X.astype(cd))
    Wp = jnp.zeros((f_in_pad, f_out_pad), cd).at[:F_in, :F_out].set(W.astype(cd))

    n_tiles = n_pad // tm
    ne = e_pad // e_blk
    nf = f_out_pad // f_blk
    vmem_limit = _vmem_limit_bytes()

    # Kernel A: per-(E,F_out) tile reduction over node-row tiles.
    t1 = pl.pallas_call(
        _edge_accum_kernel,
        out_shape=jax.ShapeDtypeStruct((e_pad, f_out_pad), cd),
        grid_spec=pltpu.PrefetchScalarGridSpec(
            num_scalar_prefetch=0,
            grid=(ne, nf, n_tiles),
            in_specs=[
                pl.BlockSpec((tm, f_in_pad), lambda e, f, n: (n, 0)),      # X tile
                pl.BlockSpec((f_in_pad, f_blk), lambda e, f, n: (0, f)),   # W col-block
                pl.BlockSpec((e_blk, tm), lambda e, f, n: (e, n)),         # H^T tile
                pl.BlockSpec((e_blk, 1), lambda e, f, n: (e, 0)),          # de_inv
            ],
            out_specs=pl.BlockSpec((e_blk, f_blk), lambda e, f, n: (e, f)),
            scratch_shapes=[pltpu.VMEM((e_blk, f_blk), jnp.float32)],
        ),
        compiler_params=pltpu.CompilerParams(
            dimension_semantics=("parallel", "parallel", "arbitrary"),
            vmem_limit_bytes=vmem_limit),
    )(Xp, Wp, prep["HTp"], prep["dep"])

    # Kernel B: per-(N,F_out) tile reduction over hyperedge blocks.
    out = pl.pallas_call(
        _node_scatter_kernel,
        out_shape=jax.ShapeDtypeStruct((n_pad, f_out_pad), jnp.float32),
        grid_spec=pltpu.PrefetchScalarGridSpec(
            num_scalar_prefetch=0,
            grid=(n_tiles, nf, ne),
            in_specs=[
                pl.BlockSpec((tm, e_blk), lambda n, f, e: (n, e)),         # H tile
                pl.BlockSpec((tm, 1), lambda n, f, e: (n, 0)),             # dv_inv
                pl.BlockSpec((e_blk, f_blk), lambda n, f, e: (e, f)),      # t1 tile
            ],
            out_specs=pl.BlockSpec((tm, f_blk), lambda n, f, e: (n, f)),
            scratch_shapes=[pltpu.VMEM((tm, f_blk), jnp.float32)],
        ),
        compiler_params=pltpu.CompilerParams(
            dimension_semantics=("parallel", "parallel", "arbitrary"),
            vmem_limit_bytes=vmem_limit),
    )(prep["Hp"], prep["dvp"], t1)

    return out[:N, :F_out]


def hypergraph_layer(X, H, D_v, D_e, W, *, compute_dtype=jnp.bfloat16,
                     max_row_tile=512, edge_block=512, f_block=512):
    """Convenience one-shot forward.  For repeated calls on a static hypergraph
    cache `preprocess_hypergraph(...)` and call `hypergraph_forward` directly."""
    prep = preprocess_hypergraph(H, D_v, D_e, compute_dtype=compute_dtype,
                                 max_row_tile=max_row_tile, edge_block=edge_block)
    return hypergraph_forward(X, W, prep, f_block=f_block)


def xavier_uniform(key, fan_in, fan_out, dtype=jnp.float32):
    """Deterministic equivalent of nn.init.xavier_uniform_."""
    limit = jnp.sqrt(6.0 / (fan_in + fan_out))
    return jax.random.uniform(key, (fan_in, fan_out), dtype=dtype,
                              minval=-limit, maxval=limit)


if __name__ == "__main__":
    key = jax.random.PRNGKey(0)
    k_w, k_x, k_h = jax.random.split(key, 3)

    # Small but non-trivial shapes (exercise padding + multi-block grids).
    N, E, F_in, F_out = 192, 160, 48, 144

    W = xavier_uniform(k_w, F_in, F_out)
    X = jax.random.normal(k_x, (N, F_in), dtype=jnp.float32)
    H = (jax.random.uniform(k_h, (N, E)) < 0.3).astype(jnp.float32)   # incidence

    # Degree matrices (diagonal, strictly positive -> invertible).
    D_v = jnp.diag(H.sum(axis=1) + 1.0)   # [N, N]
    D_e = jnp.diag(H.sum(axis=0) + 1.0)   # [E, E]

    # Pure-JAX reference following the original module formula exactly.
    D_v_inv = jnp.linalg.inv(D_v)
    D_e_inv = jnp.linalg.inv(D_e)
    theta = X @ W
    coeff = D_v_inv @ H @ D_e_inv @ H.T
    ref = coeff @ theta

    # Fast bf16 path (default), with small blocks to exercise tiling on all axes.
    prep = preprocess_hypergraph(H, D_v, D_e, compute_dtype=jnp.bfloat16,
                                 max_row_tile=128, edge_block=128)
    out_bf16 = hypergraph_forward(X, W, prep, f_block=128)
    out_bf16 = jax.block_until_ready(out_bf16)
    assert out_bf16.shape == (N, F_out)
    assert jnp.allclose(out_bf16, ref, atol=2e-2, rtol=2e-2), float(
        jnp.max(jnp.abs(out_bf16 - ref)))

    # f32 path: tight structural/tiling correctness check.
    out_f32 = hypergraph_layer(X, H, D_v, D_e, W, compute_dtype=jnp.float32)
    out_f32 = jax.block_until_ready(out_f32)
    assert out_f32.shape == (N, F_out)
    assert jnp.allclose(out_f32, ref, atol=1e-4, rtol=1e-4)

    print("KERNEL_OK")
</pallas_src>

<mosaic_0001>
module attributes {stable_mosaic.version = 11 : i64} {
  func.func @_edge_accum_kernel(%arg0: i32, %arg1: i32, %arg2: i32, %arg3: memref<128x128xbf16, #tpu.memory_space<vmem>>, %arg4: memref<128x128xbf16, #tpu.memory_space<vmem>>, %arg5: memref<128x128xbf16, #tpu.memory_space<vmem>>, %arg6: memref<128x1xf32, #tpu.memory_space<vmem>>, %arg7: memref<128x128xbf16, #tpu.memory_space<vmem>>, %arg8: memref<128x128xf32, #tpu.memory_space<vmem>>) attributes {dimension_semantics = [#tpu.dimension_semantics<parallel>, #tpu.dimension_semantics<parallel>, #tpu.dimension_semantics<arbitrary>], iteration_bounds = array<i64: 2, 2, 2>, scalar_prefetch = 0 : i64, scratch_operands = 1 : i64, tpu.core_type = #tpu.core_type<tc>, window_params = [{transform_indices = @transform_0, window_bounds = array<i64: 128, 128>}, {transform_indices = @transform_1, window_bounds = array<i64: 128, 128>}, {transform_indices = @transform_2, window_bounds = array<i64: 128, 128>}, {transform_indices = @transform_3, window_bounds = array<i64: 128, 1>}, {transform_indices = @transform_4, window_bounds = array<i64: 128, 128>}]} {
    %c0_i32 = arith.constant 0 : i32
    %0 = arith.cmpi eq, %arg2, %c0_i32 : i32
    %1 = arith.extui %0 : i1 to i32
    %c0_i32_0 = arith.constant 0 : i32
    %2 = arith.cmpi ne, %1, %c0_i32_0 : i32
    scf.if %2 {
      %cst_12 = arith.constant 0.000000e+00 : f32
      %15 = vector.broadcast %cst_12 : f32 to vector<128x128xf32>
      %c0_13 = arith.constant 0 : index
      %c0_14 = arith.constant 0 : index
      %16 = vector.load %arg8[%c0_13, %c0_14] : memref<128x128xf32, #tpu.memory_space<vmem>>, vector<128x128xf32>
      tpu.vector_store %arg8[%c0_13, %c0_14], %15 {strides = array<i32>} : memref<128x128xf32, #tpu.memory_space<vmem>>, vector<128x128xf32>,
    } else {
    }
    %c0 = arith.constant 0 : index
    %c0_1 = arith.constant 0 : index
    %3 = vector.load %arg3[%c0, %c0_1] : memref<128x128xbf16, #tpu.memory_space<vmem>>, vector<128x128xbf16>
    %c0_2 = arith.constant 0 : index
    %c0_3 = arith.constant 0 : index
    %4 = vector.load %arg4[%c0_2, %c0_3] : memref<128x128xbf16, #tpu.memory_space<vmem>>, vector<128x128xbf16>
    %cst = arith.constant dense<0.000000e+00> : vector<128x128xf32>
    %5 = tpu.matmul %3, %4, %cst {dimension_numbers = #tpu.dot_dimension_numbers<[1], [0], [0], [1], [0, 0, 1, 1], [], []>} : vector<128x128xbf16>, vector<128x128xbf16>, vector<128x128xf32> -> vector<128x128xf32>
    %c0_4 = arith.constant 0 : index
    %c0_5 = arith.constant 0 : index
    %6 = vector.load %arg8[%c0_4, %c0_5] : memref<128x128xf32, #tpu.memory_space<vmem>>, vector<128x128xf32>
    %c0_6 = arith.constant 0 : index
    %c0_7 = arith.constant 0 : index
    %7 = vector.load %arg5[%c0_6, %c0_7] : memref<128x128xbf16, #tpu.memory_space<vmem>>, vector<128x128xbf16>
    %8 = arith.truncf %5 : vector<128x128xf32> to vector<128x128xbf16>
    %cst_8 = arith.constant dense<0.000000e+00> : vector<128x128xf32>
    %9 = tpu.matmul %7, %8, %cst_8 {dimension_numbers = #tpu.dot_dimension_numbers<[1], [0], [0], [1], [0, 0, 1, 1], [], []>} : vector<128x128xbf16>, vector<128x128xbf16>, vector<128x128xf32> -> vector<128x128xf32>
    %10 = arith.addf %6, %9 : vector<128x128xf32>
    %c0_9 = arith.constant 0 : index
    %c0_10 = arith.constant 0 : index
    %11 = vector.load %arg8[%c0_9, %c0_10] : memref<128x128xf32, #tpu.memory_space<vmem>>, vector<128x128xf32>
    tpu.vector_store %arg8[%c0_9, %c0_10], %10 {strides = array<i32>} : memref<128x128xf32, #tpu.memory_space<vmem>>, vector<128x128xf32>,
    %c1_i32 = arith.constant 1 : i32
    %12 = arith.cmpi eq, %arg2, %c1_i32 : i32
    %13 = arith.extui %12 : i1 to i32
    %c0_i32_11 = arith.constant 0 : i32
    %14 = arith.cmpi ne, %13, %c0_i32_11 : i32
    scf.if %14 {
      %c0_12 = arith.constant 0 : index
      %c0_13 = arith.constant 0 : index
      %15 = vector.load %arg8[%c0_12, %c0_13] : memref<128x128xf32, #tpu.memory_space<vmem>>, vector<128x128xf32>
      %c0_14 = arith.constant 0 : index
      %c0_15 = arith.constant 0 : index
      %16 = vector.load %arg6[%c0_14, %c0_15] : memref<128x1xf32, #tpu.memory_space<vmem>>, vector<128x1xf32>
      %17 = vector.broadcast %16 : vector<128x1xf32> to vector<128x128xf32>
      %18 = arith.mulf %15, %17 : vector<128x128xf32>
      %19 = arith.truncf %18 : vector<128x128xf32> to vector<128x128xbf16>
      %c0_16 = arith.constant 0 : index
      %c0_17 = arith.constant 0 : index
      %20 = vector.load %arg7[%c0_16, %c0_17] : memref<128x128xbf16, #tpu.memory_space<vmem>>, vector<128x128xbf16>
      tpu.vector_store %arg7[%c0_16, %c0_17], %19 {strides = array<i32>} : memref<128x128xbf16, #tpu.memory_space<vmem>>, vector<128x128xbf16>,
    } else {
    }
    return
  }
  func.func @transform_0(%arg0: i32, %arg1: i32, %arg2: i32) -> (i32, i32) {
    %c0_i32 = arith.constant 0 : i32
    %c0_i32_0 = arith.constant 0 : i32
    return %arg2, %c0_i32 : i32, i32
  }
  func.func @transform_1(%arg0: i32, %arg1: i32, %arg2: i32) -> (i32, i32) {
    %c0_i32 = arith.constant 0 : i32
    %c0_i32_0 = arith.constant 0 : i32
    return %c0_i32, %arg1 : i32, i32
  }
  func.func @transform_2(%arg0: i32, %arg1: i32, %arg2: i32) -> (i32, i32) {
    %c0_i32 = arith.constant 0 : i32
    return %arg0, %arg2 : i32, i32
  }
  func.func @transform_3(%arg0: i32, %arg1: i32, %arg2: i32) -> (i32, i32) {
    %c0_i32 = arith.constant 0 : i32
    %c0_i32_0 = arith.constant 0 : i32
    return %arg0, %c0_i32 : i32, i32
  }
  func.func @transform_4(%arg0: i32, %arg1: i32, %arg2: i32) -> (i32, i32) {
    %c0_i32 = arith.constant 0 : i32
    return %arg0, %arg1 : i32, i32
  }
}

</mosaic_0001>

<bundles_post_ra>
// kernel: tpu_custom_call.1
= control target key start
LH: loop header
LB: loop body
LE: loop exit
PB: predicated region body
PF: predicated region fallthrough
CT: control target
= control target key end

     0   :  { %s2418_s0 = inlined_call_operand.hbm [shape: bf16[256,128], index: 0, kind: input, shape index: {}]   ;;  %s2419_s1 = inlined_call_operand.hbm [shape: bf16[128,256], index: 1, kind: input, shape index: {}]   ;;  %s2420_s2 = inlined_call_operand.vmem [shape: bf16[256,256], index: 2, kind: input, shape index: {}]   ;;  %s2421_s3 = inlined_call_operand.vmem [shape: f32[256,1], index: 3, kind: input, shape index: {}]   ;;  %s2422_s4 = inlined_call_operand.hbm [shape: bf16[256,256], index: 4, kind: output, shape index: {}]  }
   0x1   :  { %2436 = sst [smem:[#allocation28_spill]] %s2418_s0 }
   0x2   :  { %2437 = sst [smem:[#allocation29_spill]] %s2421_s3 }
   0x3   :  { %2438 = sst [smem:[#allocation30_spill]] %s2422_s4 }
   0x4   :  { %9 = vsyncpa [#allocation4], 0 }
   0x5   :  { %11 = vsyncpa [#allocation4 + $0x1], 0 }
   0x6   :  { %12 = vsyncpa [#allocation7], 0 }
   0x7   :  { %14 = vsyncpa [#allocation7 + $0x1], 0 }
   0x8   :  { %15 = vsyncpa [#allocation5], 0 }
   0x9   :  { %17 = vsyncpa [#allocation5 + $0x1], 0  ;;  %s1960_s15 = smov 0   ;;  %s1962_s16 = smov 0  }
   0xa   :  { %s1964_s17 = smov 0   ;;  %s1966_s18 = smov 0  }
   0xb   :  { %s1968_s19 = smov 0   ;;  %s1970_s20 = smov 0  }
   0xc   :  { %s1972_s21 = smov 0   ;;  %s1974_s22 = smov 0  }
   0xd   :  { %s1976_s23 = smov 0   ;;  %s1978_s24 = smov 0  }
   0xe   :  { %s1980_s25 = smov 0   ;;  %s1982_s26 = smov 0  }
   0xf   :  { %s1984_s27 = smov 0   ;;  %s1986_s28 = smov 0  }
  0x10   :  { %s1988_s29 = smov 0   ;;  %s1990_s30 = smov 0  }
  0x11   :  { %s1992_s5 = smov 0   ;;  %s1994_s6 = smov 0  }
  0x12 LB: > { %2439 = sst [smem:[#allocation13_spill]] %s1854_s15  ;;  %s2425_s7 = sadd.s32 4294967295, %s1922_s6   ;;  %s1922_s6 = sphi %s1994_s6, %s23_s6   ;;  %s1918_s5 = sphi %s1992_s5, %s2503_s5   ;;  %s1914_s30 = sphi %s1990_s30, %s2502_s30   ;;  %s1910_s29 = sphi %s1988_s29, %s2501_s29   ;;  %s1906_s28 = sphi %s1986_s28, %s2500_s28   ;;  %s1902_s27 = sphi %s1984_s27, %s2499_s27   ;;  %s1898_s26 = sphi %s1982_s26, %s2498_s26   ;;  %s1894_s25 = sphi %s1980_s25, %s2486_s25   ;;  %s1890_s24 = sphi %s1978_s24, %s2497_s24   ;;  %s1886_s23 = sphi %s1976_s23, %s2496_s23   ;;  %s1882_s22 = sphi %s1974_s22, %s2495_s22   ;;  %s1878_s21 = sphi %s1972_s21, %s2494_s21   ;;  %s1874_s20 = sphi %s1970_s20, %s2483_s20   ;;  %s1870_s19 = sphi %s1968_s19, %s2493_s19   ;;  %s1866_s18 = sphi %s1966_s18, %s2492_s18   ;;  %s1862_s17 = sphi %s1964_s17, %s2481_s17   ;;  %s1858_s16 = sphi %s1962_s16, %s2491_s16   ;;  %s1854_s15 = sphi %s1960_s15, %s2489_s15  }
  0x13   : > { %2440 = sst [smem:[#allocation14_spill]] %s1862_s17  ;;  %s35_s9 = sadd.s32 1, %s1910_s29 }
  0x14   : > { %2441 = sst [smem:[#allocation15_spill]] %s1878_s21  ;;  %s38_s10 = sadd.s32 1, %s1914_s30 }
  0x15   : > { %2442 = sst [smem:[#allocation16_spill]] %s1894_s25  ;;  %p36_p0 = scmp.ge.s32.totalorder %s35_s9, 2 }
  0x16   : > { %2443 = sst [smem:[#allocation17_spill]] %s1898_s26  ;;  %s42_s11 = sadd.s32 1, %s1918_s5 }
  0x17   : > { %2444 = sst [smem:[#allocation18_spill]] %s1902_s27  ;;  %s49_s12 = sadd.s32 1, %s1894_s25 }
  0x18   : > { %2445 = sst [smem:[#allocation19_spill]] %s1906_s28  ;;  %p56_p1 = scmp.ne.s32.totalorder %s1894_s25, %s1890_s24 }
  0x19   : > { %s2505_s9 = smov (%p36_p0, %s35_s9), 0  ;;  %s2507_s10 = smov (!%p36_p0, %s38_s10), %s1914_s30 }
  0x1a   : > { %2446 = sst [smem:[#allocation20_spill]] %s2505_s9  ;;  %s46_s13 = ssub.s32 %s1910_s29, %s2505_s9 }
  0x1b   : > { %p57_p2 = scmp.eq.s32.totalorder %s1922_s6, 0  ;;  %p40_p3 = scmp.ge.s32.totalorder %s2507_s10, 2 }
  0x1c   : > { %p47_p4 = scmp.eq.s32.totalorder %s46_s13, 0  ;;  %p62_p6 = scmp.ne.s32.totalorder %s1890_s24, %s1886_s23 }
  0x1d   : > { %p2066_p5 = por %p57_p2, %p56_p1  ;;  %s2509_s10 = smov (%p40_p3, %s2507_s10), 0 }
  0x1e   : > { %2448 = sst [smem:[#allocation21_spill]] %s2509_s10  ;;  %s2511_s11 = smov (!%p40_p3, %s42_s11), %s1918_s5 }
  0x1f   : > { %s2076_s8 = scalar_select %p47_p4, %s1894_s25, %s49_s12  }
  0x20   : > { %p44_p7 = scmp.ge.s32.totalorder %s2511_s11, 2  ;;  %p63_p8 = scmp.eq.s32.totalorder %s2425_s7, 0 }
  0x21   : > { %2449 = sst [smem:[#allocation22_spill]] %s2076_s8  ;;  %s72_s9 = ssub.s32 %s1914_s30, %s2509_s10 }
  0x22   : > { %s75_s4 = sadd.s32 1, %s1882_s22  ;;  %s2513_s11 = smov (%p44_p7, %s2511_s11), 0 }
  0x23   : > { %2450 = sst [smem:[#allocation23_spill]] %s2513_s11  ;;  %p2085_p9 = por %p63_p8, %p62_p6 }
  0x24   : > { %p73_p10 = scmp.eq.s32.totalorder %s72_s9, 0  ;;  %p82_p11 = scmp.ne.s32.totalorder %s1882_s22, %s1878_s21 }
  0x25   : > { %s2451_s23 = scalar_select %p2085_p9, 1, 0 }
  0x26   : > { %p88_p12 = scmp.ne.s32.totalorder %s1878_s21, %s1874_s20  ;;  %p2098_p13 = por %p82_p11, %p57_p2 }
  0x27   : > { %s2094_s12 = scalar_select %p73_p10, %s1882_s22, %s75_s4  }
  0x28   : > { %p2102_p0 = por %p88_p12, %p63_p8  ;;  %s98_s8 = ssub.s32 %s1918_s5, %s2513_s11 }
  0x29   : > { %2452 = sst [smem:[#allocation24_spill]] %s2094_s12  ;;  %s103_s27 = sadd.s32 1, %s1870_s19 }
  0x2a   : > { %s2454_s10 = scalar_select %p2102_p0, 1, 0 }
  0x2b   : > { %s100_s26 = sor.u32 %s98_s8, %s46_s13  ;;  %p110_p1 = scmp.ne.s32.totalorder %s1870_s19, %s1866_s18 }
  0x2c   : > { %p101_p3 = scmp.eq.s32.totalorder %s100_s26, 0  ;;  %s154_s20 = sor.u32 %s98_s8, %s72_s9 }
  0x2d   : > { %p2113_p4 = por %p110_p1, %p57_p2  ;;  %p155_p6 = scmp.eq.s32.totalorder %s154_s20, 0 }
  0x2e   : > { %s2118_s12 = scalar_select %p101_p3, %s1870_s19, %s103_s27  }
  0x2f   : > { %s2455_s4 = scalar_select %p2113_p4, 1, 0 }
  0x30   : > { %2456 = sst [smem:[#allocation25_spill]] %s2118_s12  ;;  %s157_s3 = sadd.s32 1, %s1862_s17 }
  0x31   : > { %p167_p7 = scmp.ne.s32.totalorder %s1862_s17, %s1858_s16  ;;  %s2458_s21 = sadd.s32 4294967295, %s1922_s6  }
  0x32   : > { %s2124_s28 = scalar_select %p155_p6, %s1862_s17, %s157_s3  }
  0x33   : > { %p168_p8 = scmp.eq.s32.totalorder %s2458_s21, 7  ;;  %p173_p10 = scmp.ne.s32.totalorder %s1858_s16, %s1854_s15 }
  0x34   : > { %2457 = sst [smem:[#allocation26_spill]] %s2124_s28  ;;  %s2459_s11 = sadd.s32 4294967294, %s1922_s6  }
  0x35   : > { %p174_p11 = scmp.eq.s32.totalorder %s2459_s11, 7  ;;  %p2132_p12 = por %p168_p8, %p167_p7 }
  0x36   : > { %p1268_p1 = scmp.ge.s32.totalorder %s1922_s6, 8 }
  0x37   : > { %s2460_s26 = scalar_select %p2132_p12, 1, 0 }
  0x38   : > { %p2136_p2 = por %p174_p11, %p173_p10  ;;  %190 = sbr.rel (%p1268_p1) target bundleno = 130 (0x82), region = 16 }
  0x39   : > { %s194_s3 = sand.u32 (!%p1268_p1), 1, %s1894_s25   ;;  %s1333_s27 = sshll.u32 (!%p1268_p1), %s1910_s29, 10 }
  0x3a   : > { %s2461_s8 = scalar_select %p2136_p2, 1, 0 }
  0x3b   : > { %s1269_s21 = sshll.u32 (!%p1268_p1), %s194_s3, 6  ;;  %s2463_s0 = sld [smem:[#allocation28_spill]] (!%p1268_p1) }
  0x3c   : > { %2462 = sst [smem:[#allocation27_spill]] %s2461_s8  ;;  %s198_s20 = scalar_lea.vmem (!%p1268_p1), [#allocation3], %s1269_s21 }
  0x3d   : > { %s205_s12 = sshll.u32 (!%p1268_p1), %s198_s20, 4  ;;  %s2150_s28 = scalar_lea.sflag (!%p1268_p1), [#allocation4], %s194_s3  ;;  %s2148_s12 = int_to_ptr.vmem [resolvable:$true] %s205_s12 }
  0x41   : > { %s2146_s11 = scalar_lea.hbm %s2463_s0, %s1333_s27  ;;  %s1688_s27 = scalar_lea.hbm %s2463_s0, 2048 }
  0x42   : > { %s1684_s17 = scalar_lea.hbm %s2146_s11, 1024  ;;  %p1689_p8 = scmp.lt.u32.totalorder %s2146_s11, %s2463_s0 }
  0x43   : > { %p1685_p3 = scmp.ne.s32.totalorder %s2146_s11, %s1684_s17  ;;  %p1690_p10 = scmp.lt.u32.totalorder %s1688_s27, %s1684_s17 }
  0x44   : > { %p1692_p1 = scmp.lt.u32.totalorder %s1684_s17, %s2146_s11 }
  0x45   : > { %p1686_p6 = pnand %p1685_p3, %p2066_p5  ;;  %p1691_p11 = por %p1690_p10, %p1689_p8 }
  0x47   : > { %p1687_p7 = pneg %p1686_p6  ;;  %p1693_p2 = por %p1692_p1, %p1691_p11 }
  0x49   : > { %p1694_p12 = pnand %p1693_p2, %p1687_p7 }
  0x4b   : > { %1697 = shalt.err (!%p1694_p12)
}
  0x4c   : > { %s1698_s3 = scalar_lea.vmem %s2148_s12, 1024  ;;  %s1924_s25 = smov [#allocation3]  }
  0x4d   : > { %p1699_p3 = scmp.ne.s32.totalorder %s2148_s12, %s1698_s3  ;;  %s1702_s8 = sshll.u32 %s1924_s25, 4  ;;  %s1703_s8 = int_to_ptr.vmem [resolvable:$false] %s1702_s8 }
  0x4e   : > { %s1704_s21 = scalar_lea.vmem %s1703_s8, 2048  ;;  %p1705_p9 = scmp.lt.s32.totalorder %s2148_s12, %s1703_s8 }
  0x4f   : > { %p1700_p6 = pnand %p1699_p3, %p2066_p5  ;;  %p1706_p4 = scmp.lt.s32.totalorder %s1704_s21, %s1698_s3 }
  0x51   : > { %p1701_p0 = pneg %p1700_p6  ;;  %p1707_p8 = por %p1706_p4, %p1705_p9 }
  0x53   : > { %p1708_p10 = pnand %p1707_p8, %p1701_p0 }
  0x55   : > { %1711 = shalt.err (!%p1708_p10)
}
  0x56   : > { %s1925_s17 = smov 64   ;;  %s1926_s20 = smov 4  }
  0x57   : > { %1495 = dma.hbm_to_vmem [thread:$0]  (%p2066_p5), %s2146_s11, 1024, %s2148_s12, %s2150_s28, %s1925_s17, %s1925_s17, %s1926_s20  }
  0x58   : > { %s215_s27 = sand.u32 1, %s1882_s22   ;;  %s1273_s9 = sshll.u32 %s1914_s30, 6 }
  0x59   : > { %s1272_s13 = sshll.u32 %s215_s27, 6  ;;  %s2182_s8 = scalar_lea.hbm %s2419_s1, %s1273_s9 }
  0x5a   : > { %s219_s21 = scalar_lea.vmem [#allocation6], %s1272_s13  ;;  %s2186_s14 = scalar_lea.sflag [#allocation7], %s215_s27 }
  0x5b   : > { %s225_s0 = sshll.u32 %s219_s21, 4  ;;  %s1712_s15 = scalar_lea.hbm %s2182_s8, 1024  ;;  %s2184_s0 = int_to_ptr.vmem [resolvable:$true] %s225_s0 }
  0x5c   : > { %p1713_p5 = scmp.ne.s32.totalorder %s2182_s8, %s1712_s15  ;;  %s1716_s11 = scalar_lea.hbm %s2419_s1, 2048 }
  0x5d   : > { %p1717_p4 = scmp.lt.u32.totalorder %s2182_s8, %s2419_s1  ;;  %p1718_p12 = scmp.lt.u32.totalorder %s1716_s11, %s1712_s15 }
  0x5e   : > { %p1714_p9 = pnand %p1713_p5, %p2098_p13  ;;  %p1720_p7 = scmp.lt.u32.totalorder %s1712_s15, %s2182_s8 }
  0x5f   : > { %p1719_p2 = por %p1718_p12, %p1717_p4 }
  0x60   : > { %p1715_p0 = pneg %p1714_p9 }
  0x61   : > { %p1721_p11 = por %p1720_p7, %p1719_p2 }
  0x63   : > { %p1722_p1 = pnand %p1721_p11, %p1715_p0 }
  0x65   : > { %1725 = shalt.err (!%p1722_p1)
}
  0x66   : > { %s1726_s27 = scalar_lea.vmem %s2184_s0, 1024  ;;  %s1927_s13 = smov [#allocation6]  }
  0x67   : > { %p1727_p3 = scmp.ne.s32.totalorder %s2184_s0, %s1726_s27  ;;  %s1730_s25 = sshll.u32 %s1927_s13, 4  ;;  %s1731_s25 = int_to_ptr.vmem [resolvable:$false] %s1730_s25 }
  0x68   : > { %s1732_s21 = scalar_lea.vmem %s1731_s25, 2048  ;;  %p1733_p10 = scmp.lt.s32.totalorder %s2184_s0, %s1731_s25 }
  0x69   : > { %p1728_p6 = pnand %p1727_p3, %p2098_p13  ;;  %p1734_p5 = scmp.lt.s32.totalorder %s1732_s21, %s1726_s27 }
  0x6b   : > { %p1729_p8 = pneg %p1728_p6  ;;  %p1735_p9 = por %p1734_p5, %p1733_p10 }
  0x6d   : > { %p1736_p4 = pnand %p1735_p9, %p1729_p8 }
  0x6f   : > { %1739 = shalt.err (!%p1736_p4)
}
  0x70   : > { %s1928_s15 = smov 128   ;;  %p2464_p0 = scmp.ne.s32.totalorder %s2455_s4, 0 }
  0x71   : > { %1496 = dma.hbm_to_vmem [thread:$0]  (%p2098_p13), %s2182_s8, 1024, %s2184_s0, %s2186_s14, %s1928_s15, %s1925_s17, %s1926_s20  }
  0x72   : > { %234 = sbr.rel (!%p2464_p0) target bundleno = 130 (0x82), region = 28  ;;  %s236_s28 = sand.u32 (%p2464_p0), 1, %s1870_s19  }
  0x73   : > { %s1334_s12 = sshll.u32 (%p2464_p0), %s1918_s5, 5  ;;  %s1274_s11 = sshll.u32 (%p2464_p0), %s236_s28, 6 }
  0x74   : > { %s241_s9 = sadd.s32 (%p2464_p0), %s1910_s29, %s1334_s12  ;;  %s238_s0 = scalar_lea.vmem (%p2464_p0), [#allocation8], %s1274_s11 }
  0x75   : > { %s1277_s3 = sshll.u32 (%p2464_p0), %s241_s9, 2 }
  0x76   : > { %s2220_s7 = scalar_lea.vmem (%p2464_p0), %s2420_s2, %s1277_s3 }
  0x77   : > { %v259_v0 = vld [vmem:[%s2220_s7] sm:$0xf] (%p2464_p0)  ;;  %v261_v1 = vld [vmem:[%s2220_s7 + $0x8] sm:$0xf] (%p2464_p0)  ;;  %v263_v2 = vld [vmem:[%s2220_s7 + $0x10] sm:$0xf] (%p2464_p0) }
  0x78   : > { %260 = vst [vmem:[%s238_s0] sm:$0xf] (%p2464_p0), %v259_v0  ;;  %262 = vst [vmem:[%s238_s0 + $0x4] sm:$0xf] (%p2464_p0), %v261_v1  ;;  %v265_v3 = vld [vmem:[%s2220_s7 + $0x18] sm:$0xf] (%p2464_p0) }
  0x79   : > { %264 = vst [vmem:[%s238_s0 + $0x8] sm:$0xf] %v263_v2  ;;  %v267_v4 = vld [vmem:[%s2220_s7 + $0x20] sm:$0xf]  ;;  %v269_v5 = vld [vmem:[%s2220_s7 + $0x28] sm:$0xf] }
  0x7a   : > { %266 = vst [vmem:[%s238_s0 + $0xc] sm:$0xf] %v265_v3  ;;  %268 = vst [vmem:[%s238_s0 + $0x10] sm:$0xf] %v267_v4  ;;  %v271_v6 = vld [vmem:[%s2220_s7 + $0x30] sm:$0xf] }
  0x7b   : > { %270 = vst [vmem:[%s238_s0 + $0x14] sm:$0xf] %v269_v5  ;;  %v273_v7 = vld [vmem:[%s2220_s7 + $0x38] sm:$0xf]  ;;  %v275_v8 = vld [vmem:[%s2220_s7 + $0x40] sm:$0xf] }
  0x7c   : > { %272 = vst [vmem:[%s238_s0 + $0x18] sm:$0xf] %v271_v6  ;;  %274 = vst [vmem:[%s238_s0 + $0x1c] sm:$0xf] %v273_v7  ;;  %v277_v9 = vld [vmem:[%s2220_s7 + $0x48] sm:$0xf] }
  0x7d   : > { %276 = vst [vmem:[%s238_s0 + $0x20] sm:$0xf] %v275_v8  ;;  %v279_v10 = vld [vmem:[%s2220_s7 + $0x50] sm:$0xf]  ;;  %v281_v11 = vld [vmem:[%s2220_s7 + $0x58] sm:$0xf] }
  0x7e   : > { %278 = vst [vmem:[%s238_s0 + $0x24] sm:$0xf] %v277_v9  ;;  %280 = vst [vmem:[%s238_s0 + $0x28] sm:$0xf] %v279_v10  ;;  %v283_v12 = vld [vmem:[%s2220_s7 + $0x60] sm:$0xf] }
  0x7f   : > { %282 = vst [vmem:[%s238_s0 + $0x2c] sm:$0xf] %v281_v11  ;;  %v285_v13 = vld [vmem:[%s2220_s7 + $0x68] sm:$0xf]  ;;  %v287_v14 = vld [vmem:[%s2220_s7 + $0x70] sm:$0xf] }
  0x80   : > { %284 = vst [vmem:[%s238_s0 + $0x30] sm:$0xf] %v283_v12  ;;  %286 = vst [vmem:[%s238_s0 + $0x34] sm:$0xf] %v285_v13  ;;  %v289_v15 = vld [vmem:[%s2220_s7 + $0x78] sm:$0xf] }
  0x81   : > { %288 = vst [vmem:[%s238_s0 + $0x38] sm:$0xf] %v287_v14  ;;  %290 = vst [vmem:[%s238_s0 + $0x3c] sm:$0xf] %v289_v15 }
  0x82 PF: > { %p1278_p13 = scmp.ge.s32.totalorder %s1922_s6, 1  ;;  %p353_p12 = scmp.lt.s32.totalorder %s1922_s6, 9 }
  0x84   : > { %p354_p2 = pnand %p1278_p13, %p353_p12 }
  0x85   : > { %s359_s4 = sand.u32 (!%p354_p2), 1, %s1890_s24   ;;  %p2465_p7 = scmp.ne.s32.totalorder (!%p354_p2), %s2451_s23, 0 }
  0x86   : > { %357 = sbr.rel (%p354_p2) target bundleno = 830 (0x33e), region = 73  ;;  %s1279_s17 = sshll.u32 (!%p354_p2), %s359_s4, 6 }
  0x87   : > { %s360_s20 = scalar_lea.sflag (!%p354_p2), [#allocation4], %s359_s4  ;;  %s2241_s8 = scalar_lea.vmem (!%p354_p2), [#allocation3], %s1279_s17 }
  0x8d   : > { %1841 = dma.done.wait (%p2465_p7), %s360_s20, 1024  }
  0x8e   : > { %1843 = vsyncadd (%p2465_p7), %s360_s20, 4294966272  ;;  %s2466_s14 = sld [smem:[#allocation15_spill]]  ;;  %p2467_p11 = scmp.ne.s32.totalorder %s2454_s10, 0 }
  0x94   : > { %s368_s25 = sand.u32 1, %s2466_s14  }
  0x95   : > { %s1280_s21 = sshll.u32 %s368_s25, 6  ;;  %s369_s15 = scalar_lea.sflag [#allocation7], %s368_s25 }
  0x96   : > { %s2248_s28 = scalar_lea.vmem [#allocation6], %s1280_s21 }
  0x97   : > { %1845 = dma.done.wait (%p2467_p11), %s369_s15, 1024  }
  0x98   : > { %1847 = vsyncadd (%p2467_p11), %s369_s15, 4294966272  ;;  %s2468_s12 = sld [smem:[#allocation19_spill]]  ;;  %s378_s11 = sand.u32 1, %s1866_s18  }
  0x99   : > { %s415_s9 = sand.u32 1, %s1858_s16   ;;  %s1281_s23 = sshll.u32 %s378_s11, 6 }
  0x9a   : > { %s1282_s3 = sshll.u32 %s415_s9, 6  ;;  %s2469_s4 = sld [smem:[#allocation29_spill]] }
  0x9b   : > { %s2264_s10 = scalar_lea.vmem [#allocation8], %s1281_s23  ;;  %s2266_s20 = scalar_lea.vmem [#allocation9], %s1282_s3 }
  0x9c   : > { %s2470_s14 = sld [smem:[#allocation17_spill]] }
  0x9e   : > { %s1283_s27 = sshll.u32 %s2468_s12, 4 }
  0x9f   : > { %p421_p1 = scmp.lt.s32.totalorder %s1283_s27, 31 }
  0xa1   : > { %s2515_s27 = smov (!%p421_p1, %s1283_s27), 31 }
  0xa2   : > { %s1284_s13 = sshll.u32 %s2515_s27, 3  ;;  %p1285_p3 = scmp.ne.s32.totalorder %s2470_s14, 0 }
  0xa3   : > { %s2262_s17 = scalar_lea.vmem %s2469_s4, %s1284_s13  ;;  %v1929_v16 = vmov (!%p1285_p3), 0.0  }
  0xa4   : > { %431 = sbr.rel (%p1285_p3) target bundleno = 172 (0xac), region = 89  ;;  %432 = vst [vmem:[#allocation2] sm:$0xff] (!%p1285_p3), %v1929_v16  ;;  %433 = vst [vmem:[#allocation2 + $0x8] sm:$0xff] (!%p1285_p3), %v1929_v16 }
  0xa5   : > { %434 = vst [vmem:[#allocation2 + $0x10] sm:$0xff] (!%p1285_p3), %v1929_v16  ;;  %435 = vst [vmem:[#allocation2 + $0x18] sm:$0xff] (!%p1285_p3), %v1929_v16 }
  0xa6   : > { %436 = vst [vmem:[#allocation2 + $0x20] sm:$0xff] (!%p1285_p3), %v1929_v16  ;;  %437 = vst [vmem:[#allocation2 + $0x28] sm:$0xff] (!%p1285_p3), %v1929_v16 }
  0xa7   : > { %438 = vst [vmem:[#allocation2 + $0x30] sm:$0xff] (!%p1285_p3), %v1929_v16  ;;  %439 = vst [vmem:[#allocation2 + $0x38] sm:$0xff] (!%p1285_p3), %v1929_v16 }
  0xa8   : > { %440 = vst [vmem:[#allocation2 + $0x40] sm:$0xff] (!%p1285_p3), %v1929_v16  ;;  %441 = vst [vmem:[#allocation2 + $0x48] sm:$0xff] (!%p1285_p3), %v1929_v16 }
  0xa9   : > { %442 = vst [vmem:[#allocation2 + $0x50] sm:$0xff] (!%p1285_p3), %v1929_v16  ;;  %443 = vst [vmem:[#allocation2 + $0x58] sm:$0xff] (!%p1285_p3), %v1929_v16 }
  0xaa   : > { %444 = vst [vmem:[#allocation2 + $0x60] sm:$0xff] (!%p1285_p3), %v1929_v16  ;;  %445 = vst [vmem:[#allocation2 + $0x68] sm:$0xff] (!%p1285_p3), %v1929_v16 }
  0xab   : > { %446 = vst [vmem:[#allocation2 + $0x70] sm:$0xff] %v1929_v16  ;;  %447 = vst [vmem:[#allocation2 + $0x78] sm:$0xff] %v1929_v16 }
  0xac PF: > { %v1658_v17 = vld [vmem:[%s2248_s28] sm:$0xff]   ;;  %v1659_v18 = vld [vmem:[%s2248_s28 + $0x8] sm:$0xff]   ;;  %v1660_v19 = vld [vmem:[%s2248_s28 + $0x10] sm:$0xff]   ;;  %s2471_s18 = sld [smem:[#allocation17_spill]] }
  0xad   : > { %1431 = vmatprep.subr.bf16.mxu0 %v1658_v17  ;;  %v1661_v20 = vld [vmem:[%s2248_s28 + $0x18] sm:$0xff]   ;;  %v1666_v21 = vld [vmem:[%s2241_s8] sm:$0xff]   ;;  %v1663_v23 = vld [vmem:[%s2248_s28 + $0x28] sm:$0xff]  }
  0xae   : > { %1432 = vmatpush3.bf16.msra.mxu0 %v1658_v17  ;;  %1447 = vmatprep.mubr.bf16.mxu0 %v1666_v21  ;;  %v1662_v22 = vld [vmem:[%s2248_s28 + $0x20] sm:$0xff]   ;;  %v1664_v24 = vld [vmem:[%s2248_s28 + $0x30] sm:$0xff]   ;;  %v1665_v25 = vld [vmem:[%s2248_s28 + $0x38] sm:$0xff]  }
  0xaf   : > { %1433 = vmatprep.subr.bf16.mxu0 %v1659_v18  ;;  %v1667_v26 = vld [vmem:[%s2241_s8 + $0x8] sm:$0xff]   ;;  %v1668_v27 = vld [vmem:[%s2241_s8 + $0x10] sm:$0xff]   ;;  %v1669_v28 = vld [vmem:[%s2241_s8 + $0x18] sm:$0xff]  }
  0xb0   : > { %v1670_v29 = vld [vmem:[%s2241_s8 + $0x20] sm:$0xff]   ;;  %v1671_v30 = vld [vmem:[%s2241_s8 + $0x28] sm:$0xff]   ;;  %v1672_v31 = vld [vmem:[%s2241_s8 + $0x30] sm:$0xff]  }
  0xb1   : > { %v1673_v32 = vld [vmem:[%s2241_s8 + $0x38] sm:$0xff]   ;;  %v1674_v33 = vld [vmem:[%s2264_s10] sm:$0xff]   ;;  %v1675_v58 = vld [vmem:[%s2264_s10 + $0x8] sm:$0xff]  }
  0xb2   : > { %1434 = vmatpush3.bf16.msra.mxu0 %v1659_v18  ;;  %1479 = vmatprep.mubr.bf16.mxu1 %v1674_v33  ;;  %v1676_v59 = vld [vmem:[%s2264_s10 + $0x10] sm:$0xff]   ;;  %v1677_v60 = vld [vmem:[%s2264_s10 + $0x18] sm:$0xff]   ;;  %v1678_v61 = vld [vmem:[%s2264_s10 + $0x20] sm:$0xff]   ;;  %p1310_p6 = scmp.ne.s32.totalorder %s2471_s18, 1 }
  0xb3   : > { %1435 = vmatprep.subr.bf16.mxu0 %v1660_v19  ;;  %v1679_v62 = vld [vmem:[%s2264_s10 + $0x28] sm:$0xff]   ;;  %v1680_v63 = vld [vmem:[%s2264_s10 + $0x30] sm:$0xff]   ;;  %v1681_v0 = vld [vmem:[%s2264_s10 + $0x38] sm:$0xff]  }
  0xb4   : > { %v675_v1 = vld [vmem:[#allocation2 + $0x10] sm:$0xff]  ;;  %v673_v2 = vld [vmem:[#allocation2] sm:$0xff]  ;;  %v676_v4 = vld [vmem:[#allocation2 + $0x18] sm:$0xff] }
  0xb5   : > { %v674_v7 = vld [vmem:[#allocation2 + $0x8] sm:$0xff]  ;;  %v679_v13 = vld [vmem:[#allocation2 + $0x30] sm:$0xff]  ;;  %v677_v14 = vld [vmem:[#allocation2 + $0x20] sm:$0xff] }
  0xb6   : > { %1436 = vmatpush3.bf16.msra.mxu0 %v1660_v19  ;;  %v680_v16 = vld [vmem:[#allocation2 + $0x38] sm:$0xff]  ;;  %v678_v19 = vld [vmem:[#allocation2 + $0x28] sm:$0xff] }
  0xb7   : > { %1437 = vmatprep.subr.bf16.mxu0 %v1661_v20 }
  0xba   : > { %1438 = vmatpush3.bf16.msra.mxu0 %v1661_v20 }
  0xbb   : > { %1439 = vmatprep.subr.bf16.mxu0 %v1662_v22 }
  0xbe   : > { %1440 = vmatpush3.bf16.msra.mxu0 %v1662_v22 }
  0xbf   : > { %1441 = vmatprep.subr.bf16.mxu0 %v1663_v23 }
  0xc2   : > { %1442 = vmatpush3.bf16.msra.mxu0 %v1663_v23 }
  0xc3   : > { %1443 = vmatprep.subr.bf16.mxu0 %v1664_v24 }
  0xc6   : > { %1444 = vmatpush3.bf16.msra.mxu0 %v1664_v24 }
  0xc7   : > { %1445 = vmatprep.subr.bf16.mxu0 %v1665_v25 }
  0xca   : > { %1446 = vmatpush3.bf16.msra.mxu0 %v1665_v25  ;;  %v683_v25 = vld [vmem:[#allocation2 + $0x50] sm:$0xff] }
  0xcd   : > { %1448 = vmatmul.mubr.bf16.vlgmr.msra.gmra.mrb[0].mxu0 %v1667_v26  ;;  %v681_v26 = vld [vmem:[#allocation2 + $0x40] sm:$0xff] }
  0xce   : > { %1451 = vmatprep.mubr.bf16.mxu0 %v1668_v27 }
  0xd5   : > { %1452 = vmatmul.mubr.bf16.gmra.mrb[4].mxu0 %v1669_v28  ;;  %v684_v28 = vld [vmem:[#allocation2 + $0x58] sm:$0xff] }
  0xd6   : > { %1455 = vmatprep.mubr.bf16.mxu0 %v1670_v29 }
  0xdd   : > { %1456 = vmatmul.mubr.bf16.gmra.mrb[8].mxu0 %v1671_v30 }
  0xde   : > { %1459 = vmatprep.mubr.bf16.mxu0 %v1672_v31  ;;  %v682_v31 = vld [vmem:[#allocation2 + $0x48] sm:$0xff] }
  0xe5   : > { %1460 = vmatmul.mubr.bf16.gmra.mrb[12].mxu0 %v1673_v32 }
 0x1a0   : > { %v1449_v34 = vpop.f32.mrb[0].mxu0 }
 0x1a1   : > { %v610_v35 = vpop.f32.mrb[1].mxu0 }
 0x1a2   : > { %v1450_v36 = vpop.f32.mrb[2].mxu0 }
 0x1a3   : > { %v706_v37 = vpack.c.bf16 %v1450_v36, %v1449_v34  ;;  %v613_v38 = vpop.f32.mrb[3].mxu0 }
 0x1a4   : > { %v705_v39 = vpack.c.bf16 %v613_v38, %v610_v35  ;;  %v685_v38 = vld [vmem:[#allocation2 + $0x60] sm:$0xff] }
 0x1a6   : > { %1463 = vmatprep.subr.bf16.mxu1 %v705_v39 }
 0x1a7   : > { %1464 = vmatpush3.bf16.msra.mxu1 %v705_v39 }
 0x1a8   : > { %v1453_v40 = vpop.f32.mrb[4].mxu0  ;;  %1465 = vmatprep.subr.bf16.mxu1 %v706_v37 }
 0x1a9   : > { %v626_v41 = vpop.f32.mrb[5].mxu0 }
 0x1aa   : > { %v1454_v42 = vpop.f32.mrb[6].mxu0 }
 0x1ab   : > { %v708_v43 = vpack.c.bf16 %v1454_v42, %v1453_v40  ;;  %v629_v44 = vpop.f32.mrb[7].mxu0  ;;  %1466 = vmatpush3.bf16.msra.mxu1 %v706_v37  ;;  %v687_v37 = vld [vmem:[#allocation2 + $0x70] sm:$0xff]  ;;  %v688_v40 = vld [vmem:[#allocation2 + $0x78] sm:$0xff] }
 0x1ac   : > { %v707_v45 = vpack.c.bf16 %v629_v44, %v626_v41 }
 0x1ae   : > { %1467 = vmatprep.subr.bf16.mxu1 %v707_v45 }
 0x1af   : > { %1468 = vmatpush3.bf16.msra.mxu1 %v707_v45 }
 0x1b0   : > { %v1457_v46 = vpop.f32.mrb[8].mxu0  ;;  %1469 = vmatprep.subr.bf16.mxu1 %v708_v43 }
 0x1b1   : > { %v642_v47 = vpop.f32.mrb[9].mxu0 }
 0x1b2   : > { %v1458_v48 = vpop.f32.mrb[10].mxu0 }
 0x1b3   : > { %v710_v49 = vpack.c.bf16 %v1458_v48, %v1457_v46  ;;  %v645_v50 = vpop.f32.mrb[11].mxu0  ;;  %1470 = vmatpush3.bf16.msra.mxu1 %v708_v43  ;;  %v686_v43 = vld [vmem:[#allocation2 + $0x68] sm:$0xff] }
 0x1b4   : > { %v709_v51 = vpack.c.bf16 %v645_v50, %v642_v47  ;;  %v910_v50 = vld [vmem:[%s2262_s17] sm:$0xff] (!%p1310_p6) }
 0x1b6   : > { %1471 = vmatprep.subr.bf16.mxu1 %v709_v51 }
 0x1b7   : > { %1472 = vmatpush3.bf16.msra.mxu1 %v709_v51  ;;  %v1930_v51 = vmov (!%p1310_p6), 0  }
 0x1b8   : > { %v1461_v52 = vpop.f32.mrb[12].mxu0  ;;  %1473 = vmatprep.subr.bf16.mxu1 %v710_v49  ;;  %1683 = vset.pattern.permute.xlu1 (!%p1310_p6), %v1930_v51 }
 0x1b9   : > { %v658_v53 = vpop.f32.mrb[13].mxu0  ;;  %1682 = vset.pattern.permute.xlu0 (!%p1310_p6), %v1930_v51 }
 0x1ba   : > { %v1462_v54 = vpop.f32.mrb[14].mxu0  ;;  %928 = vperm.xlu0 (!%p1310_p6), %1682, %v910_v50  }
 0x1bb   : > { %v712_v55 = vpack.c.bf16 %v1462_v54, %v1461_v52  ;;  %v661_v56 = vpop.f32.mrb[15].mxu0  ;;  %1474 = vmatpush3.bf16.msra.mxu1 %v710_v49  ;;  %v912_v49 = vld [vmem:[%s2262_s17 + $0x10] sm:$0xff] (!%p1310_p6)  ;;  %v913_v52 = vld [vmem:[%s2262_s17 + $0x18] sm:$0xff] (!%p1310_p6)  ;;  %v915_v54 = vld [vmem:[%s2262_s17 + $0x28] sm:$0xff] (!%p1310_p6) }
 0x1bc   : > { %v711_v57 = vpack.c.bf16 %v661_v56, %v658_v53  ;;  %938 = vperm.xlu1 (!%p1310_p6), %1683, %v912_v49   ;;  %v911_v53 = vld [vmem:[%s2262_s17 + $0x8] sm:$0xff] (!%p1310_p6)  ;;  %v917_v56 = vld [vmem:[%s2262_s17 + $0x38] sm:$0xff] (!%p1310_p6) }
 0x1be   : > { %1475 = vmatprep.subr.bf16.mxu1 %v711_v57  ;;  %933 = vperm.xlu0 (!%p1310_p6), %1682, %v911_v53  }
 0x1bf   : > { %1476 = vmatpush3.bf16.msra.mxu1 %v711_v57  ;;  %v916_v57 = vld [vmem:[%s2262_s17 + $0x30] sm:$0xff] (!%p1310_p6) }
 0x1c0   : > { %1477 = vmatprep.subr.bf16.mxu1 %v712_v55  ;;  %943 = vperm.xlu1 (!%p1310_p6), %1683, %v913_v52  }
 0x1c3   : > { %1478 = vmatpush3.bf16.msra.mxu1 %v712_v55  ;;  %v914_v55 = vld [vmem:[%s2262_s17 + $0x20] sm:$0xff] (!%p1310_p6) }
 0x1c4   : > { %953 = vperm.xlu1 (!%p1310_p6), %1683, %v915_v54   ;;  %948 = vperm.xlu0 (!%p1310_p6), %1682, %v914_v55  }
 0x1c6   : > { %1480 = vmatmul.mubr.bf16.vlgmr.msra.gmra.mrb[0].mxu1 %v1675_v58  ;;  %v919_v58 = vld [vmem:[%s2262_s17 + $0x48] sm:$0xff] (!%p1310_p6) }
 0x1c7   : > { %1483 = vmatprep.mubr.bf16.mxu1 %v1676_v59  ;;  %v918_v59 = vld [vmem:[%s2262_s17 + $0x40] sm:$0xff] (!%p1310_p6) }
 0x1c8   : > { %963 = vperm.xlu1 (!%p1310_p6), %1683, %v917_v56   ;;  %958 = vperm.xlu0 (!%p1310_p6), %1682, %v916_v57  }
 0x1cc   : > { %973 = vperm.xlu1 (!%p1310_p6), %1683, %v919_v58   ;;  %968 = vperm.xlu0 (!%p1310_p6), %1682, %v918_v59  }
 0x1ce   : > { %1484 = vmatmul.mubr.bf16.gmra.mrb[4].mxu1 %v1677_v60  ;;  %v921_v60 = vld [vmem:[%s2262_s17 + $0x58] sm:$0xff] (!%p1310_p6) }
 0x1cf   : > { %1487 = vmatprep.mubr.bf16.mxu1 %v1678_v61  ;;  %v920_v61 = vld [vmem:[%s2262_s17 + $0x50] sm:$0xff] (!%p1310_p6) }
 0x1d0   : > { %983 = vperm.xlu1 (!%p1310_p6), %1683, %v921_v60   ;;  %978 = vperm.xlu0 (!%p1310_p6), %1682, %v920_v61  }
 0x1d6   : > { %1488 = vmatmul.mubr.bf16.gmra.mrb[8].mxu1 %v1679_v62  ;;  %v923_v62 = vld [vmem:[%s2262_s17 + $0x68] sm:$0xff] (!%p1310_p6) }
 0x1d7   : > { %1491 = vmatprep.mubr.bf16.mxu1 %v1680_v63  ;;  %v922_v63 = vld [vmem:[%s2262_s17 + $0x60] sm:$0xff] (!%p1310_p6)  ;;  %993 = vperm.xlu1 (!%p1310_p6), %1683, %v923_v62  }
 0x1d8   : > { %988 = vperm.xlu0 (!%p1310_p6), %1682, %v922_v63  }
 0x1de   : > { %1492 = vmatmul.mubr.bf16.gmra.mrb[12].mxu1 %v1681_v0  ;;  %v925_v0 = vld [vmem:[%s2262_s17 + $0x78] sm:$0xff] (!%p1310_p6) }
 0x1df   : > { %1003 = vperm.xlu1 (!%p1310_p6), %1683, %v925_v0  }
 0x299   : > { %v1481_v3 = vpop.f32.mrb[0].mxu1 }
 0x29a   : > { %v860_v5 = vadd.f32 %v1481_v3, %v675_v1  ;;  %v795_v6 = vpop.f32.mrb[1].mxu1  ;;  %v924_v1 = vld [vmem:[%s2262_s17 + $0x70] sm:$0xff] (!%p1310_p6)  ;;  %v929_v3 = vpop.permute.xlu0 (!%p1310_p6), %928 }
 0x29b   : > { %v858_v8 = vadd.f32 %v795_v6, %v673_v2  ;;  %v1482_v9 = vpop.f32.mrb[2].mxu1  ;;  %998 = vperm.xlu0 (!%p1310_p6), %1682, %v924_v1   ;;  %v939_v2 = vpop.permute.xlu1 (!%p1310_p6), %938 }
 0x29c   : > { %876 = vst [vmem:[#allocation2 + $0x10] sm:$0xff] %v860_v5  ;;  %v861_v10 = vadd.f32 %v1482_v9, %v676_v4  ;;  %v798_v11 = vpop.f32.mrb[3].mxu1 }
 0x29d   : > { %874 = vst [vmem:[#allocation2] sm:$0xff] %v858_v8  ;;  %v859_v12 = vadd.f32 %v798_v11, %v674_v7 }
 0x29e   : > { %877 = vst [vmem:[#allocation2 + $0x18] sm:$0xff] %v861_v10  ;;  %v934_v9 = vpop.permute.xlu0 (!%p1310_p6), %933 }
 0x29f   : > { %875 = vst [vmem:[#allocation2 + $0x8] sm:$0xff] %v859_v12  ;;  %v944_v8 = vpop.permute.xlu1 (!%p1310_p6), %943 }
 0x2a1   : > { %v1485_v15 = vpop.f32.mrb[4].mxu1 }
 0x2a2   : > { %v864_v17 = vadd.f32 %v1485_v15, %v679_v13  ;;  %v811_v18 = vpop.f32.mrb[5].mxu1 }
 0x2a3   : > { %v862_v20 = vadd.f32 %v811_v18, %v677_v14  ;;  %v1486_v21 = vpop.f32.mrb[6].mxu1  ;;  %v896_v4 = vld [vmem:[#allocation2 + $0x10] sm:$0xff] (!%p1310_p6)  ;;  %v954_v18 = vpop.permute.xlu1 (!%p1310_p6), %953 }
 0x2a4   : > { %880 = vst [vmem:[#allocation2 + $0x30] sm:$0xff] %v864_v17  ;;  %v865_v22 = vadd.f32 %v1486_v21, %v680_v16  ;;  %v814_v23 = vpop.f32.mrb[7].mxu1  ;;  %v894_v5 = vld [vmem:[#allocation2] sm:$0xff] (!%p1310_p6)  ;;  %v1008_v10 = vmul.f32 (!%p1310_p6), %v939_v2, %v896_v4 }
 0x2a5   : > { %878 = vst [vmem:[#allocation2 + $0x20] sm:$0xff] %v862_v20  ;;  %v863_v24 = vadd.f32 %v814_v23, %v678_v19  ;;  %v897_v6 = vld [vmem:[#allocation2 + $0x18] sm:$0xff] (!%p1310_p6)  ;;  %v1006_v11 = vmul.f32 (!%p1310_p6), %v929_v3, %v894_v5  ;;  %v949_v19 = vpop.permute.xlu0 (!%p1310_p6), %948 }
 0x2a6   : > { %881 = vst [vmem:[#allocation2 + $0x38] sm:$0xff] %v865_v22  ;;  %v895_v7 = vld [vmem:[#allocation2 + $0x8] sm:$0xff] (!%p1310_p6)  ;;  %v1009_v12 = vmul.f32 (!%p1310_p6), %v944_v8, %v897_v6 }
 0x2a7   : > { %879 = vst [vmem:[#allocation2 + $0x28] sm:$0xff] %v863_v24  ;;  %v1007_v13 = vmul.f32 (!%p1310_p6), %v934_v9, %v895_v7 }
 0x2a8   : > { %v1360_v16 = vpack.c.bf16 (!%p1310_p6), %v1009_v12, %v1008_v10 }
 0x2a9   : > { %v1489_v27 = vpop.f32.mrb[8].mxu1  ;;  %v1355_v17 = vpack.c.bf16 (!%p1310_p6), %v1007_v13, %v1006_v11 }
 0x2aa   : > { %v868_v29 = vadd.f32 %v1489_v27, %v683_v25  ;;  %v827_v30 = vpop.f32.mrb[9].mxu1  ;;  %1392 = vst [vmem:[%s2266_s20 + $0x8] sm:$0xff] (!%p1310_p6), %v1360_v16   ;;  %v964_v25 = vpop.permute.xlu1 (!%p1310_p6), %963 }
 0x2ab   : > { %v866_v32 = vadd.f32 %v827_v30, %v681_v26  ;;  %v1490_v33 = vpop.f32.mrb[10].mxu1  ;;  %1356 = vst [vmem:[%s2266_s20] sm:$0xff] (!%p1310_p6), %v1355_v17   ;;  %v900_v23 = vld [vmem:[#allocation2 + $0x30] sm:$0xff] (!%p1310_p6)  ;;  %v959_v26 = vpop.permute.xlu0 (!%p1310_p6), %958 }
 0x2ac   : > { %884 = vst [vmem:[#allocation2 + $0x50] sm:$0xff] %v868_v29  ;;  %v869_v34 = vadd.f32 %v1490_v33, %v684_v28  ;;  %v830_v35 = vpop.f32.mrb[11].mxu1  ;;  %v898_v15 = vld [vmem:[#allocation2 + $0x20] sm:$0xff] (!%p1310_p6)  ;;  %v1012_v28 = vmul.f32 (!%p1310_p6), %v959_v26, %v900_v23 }
 0x2ad   : > { %882 = vst [vmem:[#allocation2 + $0x40] sm:$0xff] %v866_v32  ;;  %v867_v36 = vadd.f32 %v830_v35, %v682_v31  ;;  %v1010_v21 = vmul.f32 (!%p1310_p6), %v949_v19, %v898_v15  ;;  %v901_v22 = vld [vmem:[#allocation2 + $0x38] sm:$0xff] (!%p1310_p6) }
 0x2ae   : > { %885 = vst [vmem:[#allocation2 + $0x58] sm:$0xff] %v869_v34  ;;  %v899_v14 = vld [vmem:[#allocation2 + $0x28] sm:$0xff] (!%p1310_p6)  ;;  %v1013_v27 = vmul.f32 (!%p1310_p6), %v964_v25, %v901_v22  ;;  %v974_v32 = vpop.permute.xlu1 (!%p1310_p6), %973 }
 0x2af   : > { %883 = vst [vmem:[#allocation2 + $0x48] sm:$0xff] %v867_v36  ;;  %v1011_v20 = vmul.f32 (!%p1310_p6), %v954_v18, %v899_v14  ;;  %v969_v33 = vpop.permute.xlu0 (!%p1310_p6), %968 }
 0x2b0   : > { %v1370_v31 = vpack.c.bf16 (!%p1310_p6), %v1013_v27, %v1012_v28 }
 0x2b1   : > { %v1493_v39 = vpop.f32.mrb[12].mxu1  ;;  %893 = sbr.rel (%p1310_p6) target bundleno = 800 (0x320), region = 93  ;;  %v1365_v24 = vpack.c.bf16 (!%p1310_p6), %v1011_v20, %v1010_v21 }
 0x2b2   : > { %v872_v41 = vadd.f32 %v1493_v39, %v687_v37  ;;  %v843_v42 = vpop.f32.mrb[13].mxu1  ;;  %1394 = vst [vmem:[%s2266_s20 + $0x18] sm:$0xff] (!%p1310_p6), %v1370_v31   ;;  %v984_v39 = vpop.permute.xlu1 (!%p1310_p6), %983 }
 0x2b3   : > { %v870_v44 = vadd.f32 %v843_v42, %v685_v38  ;;  %v1494_v45 = vpop.f32.mrb[14].mxu1  ;;  %1393 = vst [vmem:[%s2266_s20 + $0x10] sm:$0xff] (!%p1310_p6), %v1365_v24   ;;  %v904_v37 = vld [vmem:[#allocation2 + $0x50] sm:$0xff] (!%p1310_p6) }
 0x2b4   : > { %888 = vst [vmem:[#allocation2 + $0x70] sm:$0xff] %v872_v41  ;;  %v873_v46 = vadd.f32 %v1494_v45, %v688_v40  ;;  %v846_v47 = vpop.f32.mrb[15].mxu1  ;;  %v902_v30 = vld [vmem:[#allocation2 + $0x40] sm:$0xff] (!%p1310_p6)  ;;  %v979_v40 = vpop.permute.xlu0 (!%p1310_p6), %978 }
 0x2b5   : > { %886 = vst [vmem:[#allocation2 + $0x60] sm:$0xff] %v870_v44  ;;  %v871_v48 = vadd.f32 %v846_v47, %v686_v43  ;;  %v1014_v35 = vmul.f32 (!%p1310_p6), %v969_v33, %v902_v30  ;;  %v905_v36 = vld [vmem:[#allocation2 + $0x58] sm:$0xff] (!%p1310_p6)  ;;  %v1016_v42 = vmul.f32 (!%p1310_p6), %v979_v40, %v904_v37 }
 0x2b6   : > { %889 = vst [vmem:[#allocation2 + $0x78] sm:$0xff] %v873_v46  ;;  %v903_v29 = vld [vmem:[#allocation2 + $0x48] sm:$0xff] (!%p1310_p6)  ;;  %v1017_v41 = vmul.f32 (!%p1310_p6), %v984_v39, %v905_v36  ;;  %v994_v46 = vpop.permute.xlu1 (!%p1310_p6), %993 }
 0x2b7   : > { %887 = vst [vmem:[#allocation2 + $0x68] sm:$0xff] %v871_v48  ;;  %v1015_v34 = vmul.f32 (!%p1310_p6), %v974_v32, %v903_v29 }
 0x2b8   : > { %v1380_v45 = vpack.c.bf16 %v1017_v41, %v1016_v42  ;;  %v989_v47 = vpop.permute.xlu0 %988 }
 0x2b9   : > { %v1375_v38 = vpack.c.bf16 %v1015_v34, %v1014_v35 }
 0x2ba   : > { %1396 = vst [vmem:[%s2266_s20 + $0x28] sm:$0xff] %v1380_v45   ;;  %v1004_v53 = vpop.permute.xlu1 %1003 }
 0x2bb   : > { %1395 = vst [vmem:[%s2266_s20 + $0x20] sm:$0xff] %v1375_v38   ;;  %v908_v51 = vld [vmem:[#allocation2 + $0x70] sm:$0xff] }
 0x2bc   : > { %v906_v44 = vld [vmem:[#allocation2 + $0x60] sm:$0xff] }
 0x2bd   : > { %v1018_v49 = vmul.f32 %v989_v47, %v906_v44  ;;  %v909_v50 = vld [vmem:[#allocation2 + $0x78] sm:$0xff] }
 0x2be   : > { %v907_v43 = vld [vmem:[#allocation2 + $0x68] sm:$0xff]  ;;  %v1021_v55 = vmul.f32 %v1004_v53, %v909_v50 }
 0x2bf   : > { %v1019_v48 = vmul.f32 %v994_v46, %v907_v43 }
 0x2c1   : > { %v1385_v52 = vpack.c.bf16 %v1019_v48, %v1018_v49 }
 0x2c3   : > { %1397 = vst [vmem:[%s2266_s20 + $0x30] sm:$0xff] %v1385_v52  }
 0x31a   : > { %v999_v54 = vpop.permute.xlu0 %998 }
 0x31b   : > { %v1020_v56 = vmul.f32 %v999_v54, %v908_v51 }
 0x31d   : > { %v1390_v57 = vpack.c.bf16 %v1021_v55, %v1020_v56 }
 0x31f   : > { %1398 = vst [vmem:[%s2266_s20 + $0x38] sm:$0xff] %v1390_v57  }
 0x320 PF: > { %s2472_s8 = sld [smem:[#allocation19_spill]]  ;;  %s2473_s25 = sld [smem:[#allocation18_spill]] }
 0x321   : > { %s1118_s28 = sshll.u32 %s2266_s20, 4  ;;  %s2474_s3 = sld [smem:[#allocation30_spill]]  ;;  %s2321_s28 = int_to_ptr.vmem [resolvable:$true] %s1118_s28 }
 0x322   : > { %s2330_s13 = scalar_lea.sflag [#allocation5], %s415_s9  ;;  %s1740_s7 = scalar_lea.vmem %s2321_s28, 1024 }
 0x323   : > { %p1741_p8 = scmp.ne.s32.totalorder %s2321_s28, %s1740_s7  ;;  %p2475_p10 = scmp.ne.s32.totalorder %s2460_s26, 0 }
 0x324   : > { %s1931_s0 = smov [#allocation9]  }
 0x325   : > { %p1742_p5 = pnand %p1741_p8, %p2475_p10  ;;  %s1744_s4 = sshll.u32 %s1931_s0, 4  ;;  %s1745_s4 = int_to_ptr.vmem [resolvable:$false] %s1744_s4 }
 0x326   : > { %s1351_s21 = sshll.u32 %s2472_s8, 5  ;;  %s1746_s17 = scalar_lea.vmem %s1745_s4, 2048 }
 0x327   : > { %s1115_s15 = sadd.s32 %s2473_s25, %s1351_s21  ;;  %p1743_p9 = pneg %p1742_p5 }
 0x328   : > { %s1330_s12 = sshll.u32 %s1115_s15, 6  ;;  %p1747_p4 = scmp.lt.s32.totalorder %s2321_s28, %s1745_s4 }
 0x329   : > { %s2326_s27 = scalar_lea.hbm %s2474_s3, %s1330_s12  ;;  %p1748_p0 = scmp.lt.s32.totalorder %s1746_s17, %s1740_s7 }
 0x32b   : > { %p1749_p13 = por %p1748_p0, %p1747_p4 }
 0x32d   : > { %p1750_p12 = pnand %p1749_p13, %p1743_p9 }
 0x32f   : > { %1753 = shalt.err (!%p1750_p12)
}
 0x330   : > { %s1754_s9 = scalar_lea.hbm %s2326_s27, 1024  ;;  %s1758_s14 = scalar_lea.hbm %s2474_s3, 4096 }
 0x331   : > { %p1755_p2 = scmp.ne.s32.totalorder %s2326_s27, %s1754_s9  ;;  %p1759_p1 = scmp.lt.u32.totalorder %s2326_s27, %s2474_s3 }
 0x332   : > { %p1760_p3 = scmp.lt.u32.totalorder %s1758_s14, %s1754_s9  ;;  %p1762_p8 = scmp.lt.u32.totalorder %s1754_s9, %s2326_s27 }
 0x333   : > { %p1756_p7 = pnand %p1755_p2, %p2475_p10 }
 0x334   : > { %p1761_p6 = por %p1760_p3, %p1759_p1 }
 0x335   : > { %p1757_p11 = pneg %p1756_p7 }
 0x336   : > { %p1763_p5 = por %p1762_p8, %p1761_p6 }
 0x338   : > { %p1764_p9 = pnand %p1763_p5, %p1757_p11 }
 0x33a   : > { %1767 = shalt.err (!%p1764_p9)
}
 0x33b   : > { %s1932_s25 = smov 64   ;;  %s1933_s21 = smov 128  }
 0x33c   : > { %s1934_s15 = smov 4  }
 0x33d   : > { %1499 = dma.vmem_to_hbm [thread:$0]  (%p2475_p10), %s2321_s28, 1024, %s2326_s27, %s2330_s13, %s1932_s25, %s1933_s21, %s1934_s15  }
 0x33e PF: > { %s2476_s12 = sld [smem:[#allocation13_spill]]  ;;  %s2477_s11 = sld [smem:[#allocation27_spill]] }
 0x33f   : > { %p1505_p4 = scmp.ge.s32.totalorder %s1922_s6, 2 }
 0x344   : > { %s1133_s23 = sand.u32 1, %s2476_s12   ;;  %p2478_p0 = scmp.ne.s32.totalorder %s2477_s11, 0 }
 0x345   : > { %s1134_s7 = scalar_lea.sflag [#allocation5], %s1133_s23 }
 0x346   : > { %p1502_p13 = pnand %p1505_p4, %p2478_p0 }
 0x348   : > { %1849 = dma.done.wait (!%p1502_p13), %s1134_s7, 1024  }
 0x349   : > { %1851 = vsyncadd (!%p1502_p13), %s1134_s7, 4294966272  ;;  %s23_s6 = sadd.s32 1, %s1922_s6   ;;  %s2480_s26 = sld [smem:[#allocation14_spill]] }
 0x34a   : > { %p2359_p12 = scmp.ge.s32.totalorder %s23_s6, 10   ;;  %s2481_s17 = sld [smem:[#allocation26_spill]] }
 0x34b   : > { %s2482_s28 = sld [smem:[#allocation25_spill]]  ;;  %s2483_s20 = sld [smem:[#allocation15_spill]] }
 0x34c   : > { %s2484_s27 = sld [smem:[#allocation24_spill]]  ;;  %s2485_s13 = sld [smem:[#allocation16_spill]] }
 0x34d   : > { %s2486_s25 = sld [smem:[#allocation22_spill]]  ;;  %s2487_s4 = sld [smem:[#allocation20_spill]] }
 0x34e   : > { %s2488_s9 = sld [smem:[#allocation21_spill]]  ;;  %s2489_s15 = smov %s1858_s16 }
 0x34f   : > { %s2490_s10 = sld [smem:[#allocation23_spill]]  ;;  %s2491_s16 = smov %s2480_s26 }
 0x350   : > { %s2492_s18 = smov %s1870_s19  ;;  %s2494_s21 = smov %s1882_s22 }
 0x351   : > { %s2493_s19 = smov %s2482_s28  ;;  %s2496_s23 = smov %s1890_s24 }
 0x352   : > { %s2495_s22 = smov %s2484_s27  ;;  %s2497_s24 = smov %s2485_s13 }
 0x353   : > { %s2498_s26 = smov %s1910_s29  ;;  %s2499_s27 = smov %s1914_s30 }
 0x354   : > { %s2500_s28 = smov %s1918_s5  ;;  %s2501_s29 = smov %s2487_s4 }
 0x355   : > { %s2502_s30 = smov %s2488_s9  ;;  %s2503_s5 = smov %s2490_s10 }
 0x356   :  { %22 = sbr.rel (!%p2359_p12) target bundleno = 18 (0x12), region = 154 }
 0x35d   :  { %1139 = vsyncpa [#allocation4], 1 }
 0x35e   :  { %1141 = vsyncpa [#allocation4 + $0x1], 1 }
 0x35f   :  { %1142 = vsyncpa [#allocation7], 1 }
 0x360   :  { %1144 = vsyncpa [#allocation7 + $0x1], 1 }
 0x361   :  { %1145 = vsyncpa [#allocation5], 1 }
 0x362   :  { %1147 = vsyncpa [#allocation5 + $0x1], 1 }

</bundles_post_ra>
